<compile_context>
chip_gen: v7x
topology: tpu7x:2x2x1
jax: 0.10.0
libtpu: 0.0.40
codegen_flags: <defaults>
</compile_context>

<pallas_src>
import jax
import jax.numpy as jnp
import numpy as np
from jax.experimental import pallas as pl
from jax.experimental.pallas import tpu as pltpu


def _round_up(x, m):
    return -(-x // m) * m


def _divisors_desc(n):
    return [d for d in range(n, 0, -1) if n % d == 0]


def _vmem_capacity_bytes():
    try:
        return int(pltpu.get_tpu_info().vmem_capacity_bytes)
    except Exception:
        return 64 << 20  # conservative fallback: assume v7x's 64 MiB per TC


def inverted_reorg(x, s):
    """Pallas equivalent of InvertedReorg(slice=s).forward(x) for NCHW `x`."""
    B, C, H, W = x.shape
    assert C % (s * s) == 0, "channels must be divisible by slice**2"
    c_out = C // (s * s)

    # Free (metadata-only) view: original channel = si*(s*c_out) + sj*c_out + c.
    x5 = x.reshape(B, s, s * c_out, H, W)

    # ---- dtype-aware VMEM block-size estimate -------------------------------
    isz = x.dtype.itemsize
    sub = {4: 8, 2: 16, 1: 32}.get(isz, 8)       # sublane packing per dtype
    h_pad = _round_up(H, sub)
    w_pad = _round_up(W, 128)
    sw_pad = _round_up(s * W, 128)
    in_bytes_per_b = s * c_out * h_pad * w_pad * isz      # (1, 1, s*c_out, H, W)
    out_bytes_per_b = c_out * h_pad * sw_pad * isz        # (1, c_out, 1, H, s*W)
    per_b = in_bytes_per_b + out_bytes_per_b

    # ---- per-generation block budget / VMEM cap -----------------------------
    if _vmem_capacity_bytes() >= (100 << 20):    # v5e / v6e: 128 MiB physical
        block_budget = 28 << 20
        vmem_cap = 96 << 20
    else:                                        # v7x: 64 MiB per TensorCore
        block_budget = 12 << 20                  # double-buffered stays <= ~32 MiB
        vmem_cap = 48 << 20

    # ---- batch tile: biggest that fits the budget, but keep the pipeline fed -
    divs = _divisors_desc(B)
    feasible = [d for d in divs if d * per_b <= block_budget] or [1]
    bt = feasible[0]
    min_step = 2 << 20
    if (B // bt) * s < 8:
        for d in feasible:
            if (B // d) * s >= 8 and d * per_b >= min_step:
                bt = d
                break
    # TODO(synk): additionally tile c_out / H when even a bt=1 slab exceeds the
    # budget (very large single images); not needed for these shapes.

    vmem_limit = int(min(vmem_cap, max(2 * bt * per_b + (4 << 20), 16 << 20)))

    def kernel(x_ref, o_ref):
        # x_ref: (bt, 1, s*c_out, H, W)   contiguous input slab for one si
        # o_ref: (bt, c_out, 1, H, s*W)   sublane-dense (H), lane-dense (s*W)
        for j in range(s):  # static unroll: full (H, W) plane per store
            o_ref[:, :, 0, :, j * W:(j + 1) * W] = \
                x_ref[:, 0, j * c_out:(j + 1) * c_out, :, :]

    out5 = pl.pallas_call(
        kernel,
        out_shape=jax.ShapeDtypeStruct((B, c_out, s, H, s * W), x.dtype),
        grid=(B // bt, s),
        in_specs=[pl.BlockSpec((bt, 1, s * c_out, H, W),
                               lambda b, i: (b, i, 0, 0, 0))],
        out_specs=pl.BlockSpec((bt, c_out, 1, H, s * W),
                               lambda b, i: (b, 0, i, 0, 0)),
        compiler_params=pltpu.CompilerParams(
            dimension_semantics=("parallel", "parallel"),
            vmem_limit_bytes=vmem_limit),
    )(x5)

    # Free reshape: merge adjacent (si, h) -> si*H + h; last dim is already s*W.
    return out5.reshape(B, c_out, s * H, s * W)


# ------------------------- reference (NumPy transcription of the torch code) -


def _inverted_reorg_ref(x_np, s):
    B, C, H, W = x_np.shape
    c = C // s // s
    y = x_np.reshape(B, s * s, c, H, W)
    y = np.ascontiguousarray(np.swapaxes(y, 1, 2))   # .transpose(1, 2).contiguous()
    y = y.reshape(B, c, s, s, H, W)
    y = np.ascontiguousarray(np.swapaxes(y, 3, 4))   # .transpose(3, 4).contiguous()
    return y.reshape(B, c, s * H, s * W)


# ------------------------- main -------------------------

if __name__ == "__main__":
    key = jax.random.PRNGKey(0)
    keys = jax.random.split(key, 4)

    cases = [
        ((2, 4, 16, 16), 2, jnp.float32),    # c_out = 1 -> output (2, 1, 32, 32)
        ((2, 8, 16, 16), 2, jnp.float32),    # c_out = 2 -> output (2, 2, 32, 32)
        ((1, 4, 8, 8), 2, jnp.float32),      # B = 1     -> output (1, 1, 16, 16)
        ((2, 16, 8, 8), 4, jnp.bfloat16),    # s = 4, bf16 -> output (2, 1, 32, 32)
    ]
    for k, (shape, s, dt) in zip(keys, cases):
        x = jax.random.normal(k, shape, dtype=jnp.float32).astype(dt)
        y = inverted_reorg(x, s)
        jax.block_until_ready(y)
        ref = _inverted_reorg_ref(np.asarray(x, dtype=np.float32), s)
        assert y.shape == ref.shape, (y.shape, ref.shape)
        np.testing.assert_array_equal(np.asarray(y, dtype=np.float32), ref)

    print("KERNEL_OK")
</pallas_src>

<mosaic_0001>
module attributes {stable_mosaic.version = 11 : i64} {
  func.func @kernel(%arg0: i32, %arg1: i32, %arg2: memref<2x1x2x16x16xf32, #tpu.memory_space<vmem>>, %arg3: memref<2x1x1x16x32xf32, #tpu.memory_space<vmem>>) attributes {dimension_semantics = [#tpu.dimension_semantics<parallel>, #tpu.dimension_semantics<parallel>], iteration_bounds = array<i64: 1, 2>, scalar_prefetch = 0 : i64, scratch_operands = 0 : i64, tpu.core_type = #tpu.core_type<tc>, window_params = [{transform_indices = @transform_0, window_bounds = array<i64: 2, 1, 2, 16, 16>}, {transform_indices = @transform_1, window_bounds = array<i64: 2, 1, 1, 16, 32>}]} {
    %c0 = arith.constant 0 : index
    %c0_0 = arith.constant 0 : index
    %c0_1 = arith.constant 0 : index
    %c0_2 = arith.constant 0 : index
    %c0_3 = arith.constant 0 : index
    %0 = vector.load %arg2[%c0, %c0_0, %c0_1, %c0_2, %c0_3] : memref<2x1x2x16x16xf32, #tpu.memory_space<vmem>>, vector<2x1x1x16x16xf32>
    %1 = vector.shape_cast %0 : vector<2x1x1x16x16xf32> to vector<2x1x16x16xf32>
    %c0_4 = arith.constant 0 : index
    %c0_5 = arith.constant 0 : index
    %c0_6 = arith.constant 0 : index
    %c0_7 = arith.constant 0 : index
    %c0_8 = arith.constant 0 : index
    %2 = vector.load %arg3[%c0_4, %c0_5, %c0_6, %c0_7, %c0_8] : memref<2x1x1x16x32xf32, #tpu.memory_space<vmem>>, vector<2x1x1x16x16xf32>
    %3 = vector.shape_cast %2 : vector<2x1x1x16x16xf32> to vector<2x1x16x16xf32>
    %4 = vector.shape_cast %1 : vector<2x1x16x16xf32> to vector<2x1x1x16x16xf32>
    tpu.vector_store %arg3[%c0_4, %c0_5, %c0_6, %c0_7, %c0_8], %4 {strides = array<i32>} : memref<2x1x1x16x32xf32, #tpu.memory_space<vmem>>, vector<2x1x1x16x16xf32>,
    %c0_9 = arith.constant 0 : index
    %c0_10 = arith.constant 0 : index
    %c1 = arith.constant 1 : index
    %c0_11 = arith.constant 0 : index
    %c0_12 = arith.constant 0 : index
    %5 = vector.load %arg2[%c0_9, %c0_10, %c1, %c0_11, %c0_12] : memref<2x1x2x16x16xf32, #tpu.memory_space<vmem>>, vector<2x1x1x16x16xf32>
    %6 = vector.shape_cast %5 : vector<2x1x1x16x16xf32> to vector<2x1x16x16xf32>
    %c0_13 = arith.constant 0 : index
    %c0_14 = arith.constant 0 : index
    %c0_15 = arith.constant 0 : index
    %c0_16 = arith.constant 0 : index
    %c16 = arith.constant 16 : index
    %7 = vector.load %arg3[%c0_13, %c0_14, %c0_15, %c0_16, %c16] : memref<2x1x1x16x32xf32, #tpu.memory_space<vmem>>, vector<2x1x1x16x16xf32>
    %8 = vector.shape_cast %7 : vector<2x1x1x16x16xf32> to vector<2x1x16x16xf32>
    %9 = vector.shape_cast %6 : vector<2x1x16x16xf32> to vector<2x1x1x16x16xf32>
    tpu.vector_store %arg3[%c0_13, %c0_14, %c0_15, %c0_16, %c16], %9 {strides = array<i32>} : memref<2x1x1x16x32xf32, #tpu.memory_space<vmem>>, vector<2x1x1x16x16xf32>,
    return
  }
  func.func @transform_0(%arg0: i32, %arg1: i32) -> (i32, i32, i32, i32, i32) {
    %c0_i32 = arith.constant 0 : i32
    %c0_i32_0 = arith.constant 0 : i32
    %c0_i32_1 = arith.constant 0 : i32
    %c0_i32_2 = arith.constant 0 : i32
    return %arg0, %arg1, %c0_i32, %c0_i32_0, %c0_i32_1 : i32, i32, i32, i32, i32
  }
  func.func @transform_1(%arg0: i32, %arg1: i32) -> (i32, i32, i32, i32, i32) {
    %c0_i32 = arith.constant 0 : i32
    %c0_i32_0 = arith.constant 0 : i32
    %c0_i32_1 = arith.constant 0 : i32
    %c0_i32_2 = arith.constant 0 : i32
    return %arg0, %c0_i32, %arg1, %c0_i32_0, %c0_i32_1 : i32, i32, i32, i32, i32
  }
}

</mosaic_0001>

<bundles_post_ra>
// kernel: tpu_custom_call.1
= control target key start
LH: loop header
LB: loop body
LE: loop exit
PB: predicated region body
PF: predicated region fallthrough
CT: control target
= control target key end

     0   :  { %6 = vsyncpa [#allocation3], 0  ;;  %s680_s0 = inlined_call_operand.hbm [shape: f32[2,2,2,16,16], index: 0, kind: input, shape index: {}]   ;;  %s681_s1 = inlined_call_operand.hbm [shape: f32[2,1,2,16,32], index: 1, kind: output, shape index: {}]  }
   0x1   :  { %8 = vsyncpa [#allocation3 + $0x1], 0 }
   0x2   :  { %9 = vsyncpa [#allocation4], 0 }
   0x3   :  { %11 = vsyncpa [#allocation4 + $0x1], 0  ;;  %s536_s6 = smov 0   ;;  %s538_s7 = smov 0  }
   0x4   :  { %s540_s8 = smov 0   ;;  %s542_s9 = smov 0  }
   0x5   :  { %s544_s10 = smov 0   ;;  %s546_s11 = smov 0  }
   0x6 LB: > { %s349_s12 = sadd.s32 4294967295, %s510_s11   ;;  %s350_s13 = sadd.s32 4294967294, %s510_s11   ;;  %s510_s11 = sphi %s546_s11, %s17_s11   ;;  %s506_s10 = sphi %s544_s10, %s690_s10   ;;  %s502_s9 = sphi %s542_s9, %s689_s9   ;;  %s498_s8 = sphi %s540_s8, %s688_s8   ;;  %s494_s7 = sphi %s538_s7, %s687_s7   ;;  %s490_s6 = sphi %s536_s6, %s686_s6  }
   0x7   : > { %s26_s14 = sadd.s32 1, %s506_s10  ;;  %s38_s15 = sadd.s32 1, %s498_s8 }
   0x8   : > { %p27_p0 = scmp.ge.s32.totalorder %s26_s14, 2  ;;  %p45_p1 = scmp.ne.s32.totalorder %s498_s8, %s494_s7 }
   0x9   : > { %p46_p2 = scmp.eq.s32.totalorder %s510_s11, 0  ;;  %p51_p3 = scmp.ne.s32.totalorder %s494_s7, %s490_s6 }
   0xa   : > { %s692_s14 = smov (%p27_p0, %s26_s14), 0  ;;  %p52_p5 = scmp.eq.s32.totalorder %s349_s12, 0 }
   0xb   : > { %p577_p4 = por %p46_p2, %p45_p1  ;;  %s34_s17 = ssub.s32 %s506_s10, %s692_s14 }
   0xc   : > { %p77_p6 = scmp.eq.s32.totalorder %s349_s12, 1  ;;  %p36_p7 = scmp.eq.s32.totalorder %s34_s17, 0 }
   0xd   : > { %p583_p8 = por %p52_p5, %p51_p3  ;;  %p83_p10 = scmp.eq.s32.totalorder %s350_s13, 1 }
   0xe   : > { %p587_p9 = por %p77_p6, %p45_p1  ;;  %p352_p12 = scmp.ge.s32.totalorder %s510_s11, 2 }
   0xf   : > { %s592_s20 = scalar_select %p36_p7, %s498_s8, %s38_s15  }
  0x10   : > { %p594_p11 = por %p83_p10, %p51_p3  ;;  %99 = sbr.rel (%p352_p12) target bundleno = 36 (0x24), region = 16 }
  0x17   : > { %s103_s22 = sand.u32 1, %s498_s8   ;;  %s370_s23 = sshll.u32 %s506_s10, 9 }
  0x18   : > { %s353_s24 = sshll.u32 %s103_s22, 6  ;;  %s116_s27 = scalar_lea.hbm %s680_s0, %s370_s23 }
  0x19   : > { %s372_s28 = scalar_select %p577_p4, [#allocation0], [#allocation10] }
  0x1a   : > { %s107_s29 = scalar_lea.vmem [#allocation2], %s353_s24  ;;  %s512_s3 = smov 1024  }
  0x1b   : > { %s129_s30 = sshll.u32 %s107_s29, 4  ;;  %s121_s2 = sld [smem:[%s372_s28]]   ;;  %s130_s30 = int_to_ptr.vmem [resolvable:$true] %s129_s30 }
  0x1c   : > { %373 = sst [smem:[#allocation7]] (%p577_p4), %s512_s3  ;;  %s513_s4 = smov 512  }
  0x1d   : > { %374 = sst [smem:[#allocation7 + $0x1]] (%p577_p4), %s513_s4  ;;  %s514_s5 = smov 4  }
  0x1e   : > { %375 = sst [smem:[#allocation7 + $0x2]] (%p577_p4), %s514_s5  ;;  %s515_s12 = smov 128  }
  0x1f   : > { %376 = sst [smem:[#allocation7 + $0x3]] (%p577_p4), %s515_s12  ;;  %s516_s15 = smov 8  }
  0x20   : > { %377 = sst [smem:[#allocation7 + $0x4]] (%p577_p4), %s515_s12  ;;  %s104_s23 = scalar_lea.sflag [#allocation3], %s103_s22 }
  0x21   : > { %s356_s13 = sshll.u32 %s121_s2, 26  ;;  %378 = sst [smem:[#allocation7 + $0x5]] (%p577_p4), %s516_s15 }
  0x22   : > { %s357_s17 = sadd.s32 134217728, %s356_s13  ;;  %s517_s24 = smov [#allocation6]  }
  0x23   : > { %379 = dma.general (%p577_p4), %s116_s27, 1024, %s130_s30, %s104_s23, %s517_s24, [#allocation7], %s357_s17, 0  }
  0x24 PF: > { %p358_p13 = scmp.ge.s32.totalorder %s510_s11, 1  ;;  %p150_p0 = scmp.lt.s32.totalorder %s510_s11, 3 }
  0x26   : > { %p151_p1 = pnand %p358_p13, %p150_p0 }
  0x27   : > { %s625_s25 = sand.u32 (!%p151_p1), 1, %s494_s7  }
  0x28   : > { %154 = sbr.rel (%p151_p1) target bundleno = 179 (0xb3), region = 24  ;;  %s359_s26 = sshll.u32 (!%p151_p1), %s625_s25, 6 }
  0x29   : > { %s157_s28 = scalar_lea.sflag (!%p151_p1), [#allocation3], %s625_s25  ;;  %s160_s29 = scalar_lea.vmem (!%p151_p1), [#allocation2], %s359_s26 }
  0x2f   : > { %481 = dma.done.wait (%p583_p8), %s157_s28, 1024  }
  0x30   : > { %483 = vsyncadd (%p583_p8), %s157_s28, 4294966272  ;;  %s360_s16 = sshll.u32 %s625_s25, 5  ;;  %vm185_vm0 = vcmask 130048   ;;  %v363_v0 = vld [vmem:[%s160_s29 + $0x30] sm:$0xff]  ;;  %v364_v2 = vld [vmem:[%s160_s29 + $0x38] sm:$0xff]  ;;  %s518_s22 = smov 16  }
  0x31   : > { %v361_v1 = vld [vmem:[%s160_s29 + $0x10] sm:$0xff]  ;;  %203 = vrot.lane.b32.xlu1 %v363_v0, %s518_s22  ;;  %v362_v3 = vld [vmem:[%s160_s29 + $0x18] sm:$0xff]  ;;  %v183_v4 = vld [vmem:[%s160_s29 + $0x20] sm:$0xff]  ;;  %s178_s27 = scalar_lea.vmem [#allocation5], %s360_s16  ;;  %vm211_vm1 = vcmask 261248   ;;  %s217_s18 = scalar_lea.sflag [#allocation4], %s625_s25 }
  0x32   : > { %199 = vrot.lane.b32.xlu0 %v361_v1, %s518_s22  ;;  %188 = vst.msk [vmem:[%s178_s27 + $0x10] sm:$0xff] %vm185_vm0, %v183_v4  ;;  %v181_v5 = vld [vmem:[%s160_s29] sm:$0xff]  ;;  %v184_v6 = vld [vmem:[%s160_s29 + $0x28] sm:$0xff] }
  0x33   : > { %v182_v7 = vld [vmem:[%s160_s29 + $0x8] sm:$0xff]  ;;  %186 = vst.msk [vmem:[%s178_s27] sm:$0xff] %vm185_vm0, %v181_v5  ;;  %189 = vst.msk [vmem:[%s178_s27 + $0x18] sm:$0xff] %vm185_vm0, %v184_v6 }
  0x34   : > { %187 = vst.msk [vmem:[%s178_s27 + $0x8] sm:$0xff] %vm185_vm0, %v182_v7 }
  0x35   : > { %205 = vrot.lane.b32.xlu1 %v364_v2, %s518_s22 }
  0x36   : > { %201 = vrot.lane.b32.xlu0 %v362_v3, %s518_s22 }
  0xa3   : > { %v204_v8 = vpop.permute.xlu1 %203 }
  0xa4   : > { %v200_v9 = vpop.permute.xlu0 %199  ;;  %214 = vst.msk [vmem:[%s178_s27 + $0x10] sm:$0xff] %vm211_vm1, %v204_v8 }
  0xa5   : > { %212 = vst.msk [vmem:[%s178_s27] sm:$0xff] %vm211_vm1, %v200_v9 }
  0xa7   : > { %v206_v10 = vpop.permute.xlu1 %205 }
  0xa8   : > { %v202_v11 = vpop.permute.xlu0 %201  ;;  %215 = vst.msk [vmem:[%s178_s27 + $0x18] sm:$0xff] %vm211_vm1, %v206_v10 }
  0xa9   : > { %213 = vst.msk [vmem:[%s178_s27 + $0x8] sm:$0xff] %vm211_vm1, %v202_v11 }
  0xaa   : > { %s371_s30 = sshll.u32 %s502_s9, 8  ;;  %s249_s2 = sshll.u32 %s178_s27, 4  ;;  %s250_s2 = int_to_ptr.vmem [resolvable:$true] %s249_s2 }
  0xab   : > { %s232_s5 = scalar_lea.hbm %s681_s1, %s371_s30  ;;  %s519_s12 = smov 256  }
  0xac   : > { %381 = sst [smem:[#allocation9]] (%p587_p9), %s519_s12  ;;  %s520_s13 = smov 512  }
  0xad   : > { %382 = sst [smem:[#allocation9 + $0x1]] (%p587_p9), %s520_s13  ;;  %s521_s15 = smov 2  }
  0xae   : > { %383 = sst [smem:[#allocation9 + $0x2]] (%p587_p9), %s521_s15  ;;  %s522_s17 = smov 128  }
  0xaf   : > { %384 = sst [smem:[#allocation9 + $0x3]] (%p587_p9), %s522_s17  ;;  %s523_s9 = smov 8  }
  0xb0   : > { %385 = sst [smem:[#allocation9 + $0x4]] (%p587_p9), %s522_s17  ;;  %s524_s23 = smov [#allocation8]  }
  0xb1   : > { %386 = sst [smem:[#allocation9 + $0x5]] (%p587_p9), %s523_s9  ;;  %s525_s24 = smov 0  }
  0xb2   : > { %387 = dma.general (%p587_p9), %s250_s2, 512, %s232_s5, %s217_s18, %s524_s23, [#allocation9], %s525_s24, 0  }
  0xb3 PF: > { %s277_s25 = sand.u32 1, %s490_s6   ;;  %p390_p2 = pnand %p352_p12, %p594_p11 }
  0xb4   : > { %s278_s26 = scalar_lea.sflag [#allocation4], %s277_s25 }
  0xb5   : > { %485 = dma.done.wait (!%p390_p2), %s278_s26, 512  }
  0xb6   : > { %487 = vsyncadd (!%p390_p2), %s278_s26, 4294966784  ;;  %s17_s11 = sadd.s32 1, %s510_s11   ;;  %s686_s6 = smov %s494_s7 }
  0xb7   : > { %p14_p3 = scmp.ge.s32.totalorder %s17_s11, 4   ;;  %s687_s7 = smov %s498_s8 }
  0xb8   : > { %s688_s8 = smov %s592_s20  ;;  %s689_s9 = smov %s506_s10 }
  0xb9   : > { %s690_s10 = smov %s692_s14  ;;  %16 = sbr.rel (!%p14_p3) target bundleno = 6 (0x6), region = 80 }
  0xc0   :  { %283 = vsyncpa [#allocation3], 1 }
  0xc1   :  { %285 = vsyncpa [#allocation3 + $0x1], 1 }
  0xc2   :  { %286 = vsyncpa [#allocation4], 1 }
  0xc3   :  { %288 = vsyncpa [#allocation4 + $0x1], 1 }

</bundles_post_ra>
